<compile_context>
chip_gen: v6e
topology: v6e:2x2x1
jax: 0.10.0
libtpu: 0.0.40
codegen_flags: <defaults>
</compile_context>

<pallas_src>
import functools

import jax
import jax.numpy as jnp
from jax import lax
from jax.experimental import pallas as pl
from jax.experimental.pallas import tpu as pltpu

OMEGA = 0.3            # Richardson relaxation factor (stand-in for abstract _step)
HIST_ROWS = 8          # history rows per store (one full sublane tile)
_UNROLL_CHUNKS = 8     # fully unroll the chunk loop below this many chunks


# ----------------------------- Pallas kernel ------------------------------ #
def _solver_kernel(at_ref, b_ref, x0_ref, hist_ref, *, n_chunks, omega):
    """n_chunks * HIST_ROWS Richardson steps for TB batch elements.

    at_ref  : (TB, n, n)  A^T (pre-transposed in wrapper -> native (K, N) MXU
                           layout, no in-kernel transpose)
    b_ref   : (TB, 1, n)  rhs, lane-dense row vectors
    x0_ref  : (TB, 1, n)  initial guess
    hist_ref: (TB, n_chunks*HIST_ROWS, n)  history, stored 8 sublanes at a time
    """
    b = b_ref[...].astype(jnp.float32)     # (TB, 1, n)
    x = x0_ref[...].astype(jnp.float32)    # (TB, 1, n)

    # Batched mat-vec: contract x dim 2 with At dim 1 (K on sublanes of At,
    # N on lanes) -> lane-dense (TB, 1, n) result straight off the MXU.
    dn = (((2,), (1,)), ((0,), (0,)))

    def step(x):
        ax = lax.dot_general(x.astype(at_ref.dtype), at_ref[...],
                             dimension_numbers=dn,
                             preferred_element_type=jnp.float32)
        return x + omega * (b - ax)

    def chunk(x, start):
        rows = []
        for _ in range(HIST_ROWS):
            x = step(x)
            rows.append(x)
        # One full-sublane, unmasked store per 8 iterations.
        hist_ref[:, pl.ds(start, HIST_ROWS), :] = (
            jnp.concatenate(rows, axis=1).astype(hist_ref.dtype))
        return x

    if n_chunks <= _UNROLL_CHUNKS:
        # static unroll: static sublane-aligned store indices, full LLO view
        for c in range(n_chunks):
            x = chunk(x, c * HIST_ROWS)
    else:
        def body(c, x):
            return chunk(x, pl.multiple_of(c * HIST_ROWS, HIST_ROWS))
        lax.fori_loop(0, n_chunks, body, x)


# ------------------------------ wrapper ------------------------------------ #
def _round_up(v, m):
    return ((v + m - 1) // m) * m


def _vmem_budget_and_limit():
    """Per-generation VMEM sizing (v7x: 64 MiB/TC; v5e/v6e: 128 MiB)."""
    try:
        cap = int(pltpu.get_tpu_info().vmem_capacity_bytes)
    except Exception:
        cap = 64 * 1024 * 1024          # conservative (v7x) fallback
    budget = int(cap * 0.6)             # double-buffered working-set target
    limit = max(32 * 1024 * 1024, min(int(cap * 0.8), cap - (8 << 20)))
    return budget, limit


def _choose_tb(bs, n_pad, maxiter_pad, a_bytes, budget):
    """Largest divisor of bs whose double-buffered working set fits budget."""
    def est(tb):
        a_buf = 2 * tb * n_pad * n_pad * a_bytes       # A^T, double-buffered
        vec = 2 * 2 * tb * n_pad * 4                   # b + x0
        hist = 2 * tb * maxiter_pad * n_pad * 4        # history block
        return a_buf + vec + hist
    for tb in sorted((d for d in range(1, bs + 1) if bs % d == 0), reverse=True):
        if est(tb) <= budget:
            return tb
    return 1


def pallas_solver_history(A, b_row, x0_row, maxiter, omega=OMEGA,
                          cast_a_bf16=False):
    """Runs `maxiter` solver steps; returns history (bs, maxiter, n), f32.

    A: (bs, n, n), b_row: (bs, 1, n), x0_row: (bs, 1, n)
    """
    bs, n, _ = A.shape
    n_pad = _round_up(max(n, 128), 128)            # lane-dense stores / MXU lanes
    maxiter_pad = _round_up(maxiter, HIST_ROWS)    # full-sublane history stores
    n_chunks = maxiter_pad // HIST_ROWS

    # Pre-transpose once (native (K, N) MXU layout) and zero-pad to lane grid.
    At = jnp.swapaxes(A, 1, 2)
    if n_pad != n:
        At = jnp.pad(At, ((0, 0), (0, n_pad - n), (0, n_pad - n)))
        b_row = jnp.pad(b_row, ((0, 0), (0, 0), (0, n_pad - n)))
        x0_row = jnp.pad(x0_row, ((0, 0), (0, 0), (0, n_pad - n)))
    if cast_a_bf16:
        # TODO(synk): re-validate Richardson convergence vs f32 if enabled.
        At = At.astype(jnp.bfloat16)
    a_bytes = At.dtype.itemsize

    budget, vmem_limit = _vmem_budget_and_limit()
    tb = _choose_tb(bs, n_pad, maxiter_pad, a_bytes, budget)
    grid = (bs // tb,)

    kernel = functools.partial(_solver_kernel, n_chunks=n_chunks, omega=omega)
    cost = pl.CostEstimate(
        flops=2 * bs * maxiter_pad * n_pad * n_pad,
        transcendentals=0,
        bytes_accessed=bs * (a_bytes * n_pad * n_pad
                             + 8 * n_pad
                             + 4 * maxiter_pad * n_pad))

    hist = pl.pallas_call(
        kernel,
        out_shape=jax.ShapeDtypeStruct((bs, maxiter_pad, n_pad), jnp.float32),
        grid_spec=pltpu.PrefetchScalarGridSpec(
            num_scalar_prefetch=0,
            grid=grid,
            in_specs=[
                pl.BlockSpec((tb, n_pad, n_pad), lambda bb: (bb, 0, 0)),  # A^T
                pl.BlockSpec((tb, 1, n_pad), lambda bb: (bb, 0, 0)),      # b
                pl.BlockSpec((tb, 1, n_pad), lambda bb: (bb, 0, 0)),      # x0
            ],
            out_specs=pl.BlockSpec((tb, maxiter_pad, n_pad),
                                   lambda bb: (bb, 0, 0)),
        ),
        compiler_params=pltpu.CompilerParams(
            # batch blocks are independent -> feeds both v7x TensorCores
            dimension_semantics=("parallel",),
            vmem_limit_bytes=vmem_limit),
        cost_estimate=cost,
    )(At, b_row, x0_row)

    return hist[:, :maxiter, :n]


# ------------------------- module-equivalent glue -------------------------- #
def extract_param(name, params_learn, theta):
    v = params_learn[name]
    return theta[:, v["start"]:v["end"]]


def solver_forward(tau, theta, params_learn):
    """JAX/Pallas equivalent of PytorchSolver.forward (early_stop=False)."""
    A = tau["A"]
    bs, n, _ = A.shape
    b = tau["b"].reshape(bs, n)

    # maxiter must be static (host) -- avoid device->host syncs under jit
    maxiter = tau["maxiter"]
    if not isinstance(maxiter, int):
        maxiter = int(jnp.max(jnp.asarray(maxiter)))

    if "x0" in params_learn:
        x0 = extract_param("x0", params_learn, theta).reshape(bs, n)
        assert x0.shape == b.shape
    else:
        x0 = jnp.zeros_like(b)

    # TODO(synk): residual/btol (and x_sol/error/xtol) from _setup are only
    # consumed by the early_stop path, which has no static-shape Pallas
    # equivalent; intentionally not computed (saves a batched A@x0 + 2 norms).

    hist = pallas_solver_history(A, b[:, None, :], x0[:, None, :], maxiter)
    # match torch.stack(history, dim=1) with x of shape (bs, n, 1)
    return hist.reshape(bs, maxiter, n, 1)


# ------------------------------- reference --------------------------------- #
def reference_forward(A, b_col, x0_col, maxiter):
    x = x0_col
    hist = []
    for _ in range(maxiter):
        x = x + OMEGA * (b_col - A @ x)
        hist.append(x)
    return jnp.stack(hist, axis=1)


# --------------------------------- main ------------------------------------ #
if __name__ == "__main__":
    bs, n, maxiter = 2, 32, 8

    key = jax.random.PRNGKey(0)
    kA, kb, kth = jax.random.split(key, 3)

    # Diagonally-dominant A so the Richardson iteration is well behaved.
    A = 0.1 * jax.random.uniform(kA, (bs, n, n), jnp.float32) \
        + 2.0 * jnp.eye(n, dtype=jnp.float32)[None]
    b = jax.random.normal(kb, (bs, n), jnp.float32)
    theta = jax.random.normal(kth, (bs, n), jnp.float32)  # learned x0

    params_learn = {"x0": {"dim": n, "start": 0, "end": n}}
    tau = {
        "A": A,
        "b": b,
        "maxiter": maxiter,          # static Python int (no host sync)
        "rtol": jnp.float32(1e-6),
    }

    history = solver_forward(tau, theta, params_learn)
    history = jax.block_until_ready(history)

    # correctness check against a pure-JAX reference
    x0 = theta.reshape(bs, n, 1)
    ref = reference_forward(A, b.reshape(bs, n, 1), x0, maxiter)
    assert history.shape == (bs, maxiter, n, 1), history.shape
    assert jnp.allclose(history, ref, atol=1e-4, rtol=1e-4), \
        float(jnp.max(jnp.abs(history - ref)))

    print("KERNEL_OK")
</pallas_src>

<mosaic_0001>
module attributes {stable_mosaic.version = 11 : i64} {
  func.func @_solver_kernel(%arg0: i32, %arg1: memref<2x128x128xf32, #tpu.memory_space<vmem>>, %arg2: memref<2x1x128xf32, #tpu.memory_space<vmem>>, %arg3: memref<2x1x128xf32, #tpu.memory_space<vmem>>, %arg4: memref<2x8x128xf32, #tpu.memory_space<vmem>>) attributes {dimension_semantics = [#tpu.dimension_semantics<parallel>], iteration_bounds = array<i64: 1>, scalar_prefetch = 0 : i64, scratch_operands = 0 : i64, tpu.core_type = #tpu.core_type<tc>, window_params = [{transform_indices = @transform_0, window_bounds = array<i64: 2, 128, 128>}, {transform_indices = @transform_1, window_bounds = array<i64: 2, 1, 128>}, {transform_indices = @transform_2, window_bounds = array<i64: 2, 1, 128>}, {transform_indices = @transform_3, window_bounds = array<i64: 2, 8, 128>}]} {
    %c0 = arith.constant 0 : index
    %c0_0 = arith.constant 0 : index
    %c0_1 = arith.constant 0 : index
    %0 = vector.load %arg2[%c0, %c0_0, %c0_1] : memref<2x1x128xf32, #tpu.memory_space<vmem>>, vector<2x1x128xf32>
    %c0_2 = arith.constant 0 : index
    %c0_3 = arith.constant 0 : index
    %c0_4 = arith.constant 0 : index
    %1 = vector.load %arg3[%c0_2, %c0_3, %c0_4] : memref<2x1x128xf32, #tpu.memory_space<vmem>>, vector<2x1x128xf32>
    %c0_5 = arith.constant 0 : index
    %c0_6 = arith.constant 0 : index
    %c0_7 = arith.constant 0 : index
    %2 = vector.load %arg1[%c0_5, %c0_6, %c0_7] : memref<2x128x128xf32, #tpu.memory_space<vmem>>, vector<2x128x128xf32>
    %cst = arith.constant dense<0.000000e+00> : vector<2x1x128xf32>
    %3 = tpu.matmul %1, %2, %cst {dimension_numbers = #tpu.dot_dimension_numbers<[2], [1], [1], [2], [0, 0, 0, 1, 1, 2], [0], [0]>} : vector<2x1x128xf32>, vector<2x128x128xf32>, vector<2x1x128xf32> -> vector<2x1x128xf32>
    %4 = arith.subf %0, %3 : vector<2x1x128xf32>
    %cst_8 = arith.constant 3.000000e-01 : f32
    %5 = vector.broadcast %cst_8 : f32 to vector<2x1x128xf32>
    %6 = arith.mulf %5, %4 : vector<2x1x128xf32>
    %7 = arith.addf %1, %6 : vector<2x1x128xf32>
    %c0_9 = arith.constant 0 : index
    %c0_10 = arith.constant 0 : index
    %c0_11 = arith.constant 0 : index
    %8 = vector.load %arg1[%c0_9, %c0_10, %c0_11] : memref<2x128x128xf32, #tpu.memory_space<vmem>>, vector<2x128x128xf32>
    %cst_12 = arith.constant dense<0.000000e+00> : vector<2x1x128xf32>
    %9 = tpu.matmul %7, %8, %cst_12 {dimension_numbers = #tpu.dot_dimension_numbers<[2], [1], [1], [2], [0, 0, 0, 1, 1, 2], [0], [0]>} : vector<2x1x128xf32>, vector<2x128x128xf32>, vector<2x1x128xf32> -> vector<2x1x128xf32>
    %10 = arith.subf %0, %9 : vector<2x1x128xf32>
    %cst_13 = arith.constant 3.000000e-01 : f32
    %11 = vector.broadcast %cst_13 : f32 to vector<2x1x128xf32>
    %12 = arith.mulf %11, %10 : vector<2x1x128xf32>
    %13 = arith.addf %7, %12 : vector<2x1x128xf32>
    %c0_14 = arith.constant 0 : index
    %c0_15 = arith.constant 0 : index
    %c0_16 = arith.constant 0 : index
    %14 = vector.load %arg1[%c0_14, %c0_15, %c0_16] : memref<2x128x128xf32, #tpu.memory_space<vmem>>, vector<2x128x128xf32>
    %cst_17 = arith.constant dense<0.000000e+00> : vector<2x1x128xf32>
    %15 = tpu.matmul %13, %14, %cst_17 {dimension_numbers = #tpu.dot_dimension_numbers<[2], [1], [1], [2], [0, 0, 0, 1, 1, 2], [0], [0]>} : vector<2x1x128xf32>, vector<2x128x128xf32>, vector<2x1x128xf32> -> vector<2x1x128xf32>
    %16 = arith.subf %0, %15 : vector<2x1x128xf32>
    %cst_18 = arith.constant 3.000000e-01 : f32
    %17 = vector.broadcast %cst_18 : f32 to vector<2x1x128xf32>
    %18 = arith.mulf %17, %16 : vector<2x1x128xf32>
    %19 = arith.addf %13, %18 : vector<2x1x128xf32>
    %c0_19 = arith.constant 0 : index
    %c0_20 = arith.constant 0 : index
    %c0_21 = arith.constant 0 : index
    %20 = vector.load %arg1[%c0_19, %c0_20, %c0_21] : memref<2x128x128xf32, #tpu.memory_space<vmem>>, vector<2x128x128xf32>
    %cst_22 = arith.constant dense<0.000000e+00> : vector<2x1x128xf32>
    %21 = tpu.matmul %19, %20, %cst_22 {dimension_numbers = #tpu.dot_dimension_numbers<[2], [1], [1], [2], [0, 0, 0, 1, 1, 2], [0], [0]>} : vector<2x1x128xf32>, vector<2x128x128xf32>, vector<2x1x128xf32> -> vector<2x1x128xf32>
    %22 = arith.subf %0, %21 : vector<2x1x128xf32>
    %cst_23 = arith.constant 3.000000e-01 : f32
    %23 = vector.broadcast %cst_23 : f32 to vector<2x1x128xf32>
    %24 = arith.mulf %23, %22 : vector<2x1x128xf32>
    %25 = arith.addf %19, %24 : vector<2x1x128xf32>
    %c0_24 = arith.constant 0 : index
    %c0_25 = arith.constant 0 : index
    %c0_26 = arith.constant 0 : index
    %26 = vector.load %arg1[%c0_24, %c0_25, %c0_26] : memref<2x128x128xf32, #tpu.memory_space<vmem>>, vector<2x128x128xf32>
    %cst_27 = arith.constant dense<0.000000e+00> : vector<2x1x128xf32>
    %27 = tpu.matmul %25, %26, %cst_27 {dimension_numbers = #tpu.dot_dimension_numbers<[2], [1], [1], [2], [0, 0, 0, 1, 1, 2], [0], [0]>} : vector<2x1x128xf32>, vector<2x128x128xf32>, vector<2x1x128xf32> -> vector<2x1x128xf32>
    %28 = arith.subf %0, %27 : vector<2x1x128xf32>
    %cst_28 = arith.constant 3.000000e-01 : f32
    %29 = vector.broadcast %cst_28 : f32 to vector<2x1x128xf32>
    %30 = arith.mulf %29, %28 : vector<2x1x128xf32>
    %31 = arith.addf %25, %30 : vector<2x1x128xf32>
    %c0_29 = arith.constant 0 : index
    %c0_30 = arith.constant 0 : index
    %c0_31 = arith.constant 0 : index
    %32 = vector.load %arg1[%c0_29, %c0_30, %c0_31] : memref<2x128x128xf32, #tpu.memory_space<vmem>>, vector<2x128x128xf32>
    %cst_32 = arith.constant dense<0.000000e+00> : vector<2x1x128xf32>
    %33 = tpu.matmul %31, %32, %cst_32 {dimension_numbers = #tpu.dot_dimension_numbers<[2], [1], [1], [2], [0, 0, 0, 1, 1, 2], [0], [0]>} : vector<2x1x128xf32>, vector<2x128x128xf32>, vector<2x1x128xf32> -> vector<2x1x128xf32>
    %34 = arith.subf %0, %33 : vector<2x1x128xf32>
    %cst_33 = arith.constant 3.000000e-01 : f32
    %35 = vector.broadcast %cst_33 : f32 to vector<2x1x128xf32>
    %36 = arith.mulf %35, %34 : vector<2x1x128xf32>
    %37 = arith.addf %31, %36 : vector<2x1x128xf32>
    %c0_34 = arith.constant 0 : index
    %c0_35 = arith.constant 0 : index
    %c0_36 = arith.constant 0 : index
    %38 = vector.load %arg1[%c0_34, %c0_35, %c0_36] : memref<2x128x128xf32, #tpu.memory_space<vmem>>, vector<2x128x128xf32>
    %cst_37 = arith.constant dense<0.000000e+00> : vector<2x1x128xf32>
    %39 = tpu.matmul %37, %38, %cst_37 {dimension_numbers = #tpu.dot_dimension_numbers<[2], [1], [1], [2], [0, 0, 0, 1, 1, 2], [0], [0]>} : vector<2x1x128xf32>, vector<2x128x128xf32>, vector<2x1x128xf32> -> vector<2x1x128xf32>
    %40 = arith.subf %0, %39 : vector<2x1x128xf32>
    %cst_38 = arith.constant 3.000000e-01 : f32
    %41 = vector.broadcast %cst_38 : f32 to vector<2x1x128xf32>
    %42 = arith.mulf %41, %40 : vector<2x1x128xf32>
    %43 = arith.addf %37, %42 : vector<2x1x128xf32>
    %c0_39 = arith.constant 0 : index
    %c0_40 = arith.constant 0 : index
    %c0_41 = arith.constant 0 : index
    %44 = vector.load %arg1[%c0_39, %c0_40, %c0_41] : memref<2x128x128xf32, #tpu.memory_space<vmem>>, vector<2x128x128xf32>
    %cst_42 = arith.constant dense<0.000000e+00> : vector<2x1x128xf32>
    %45 = tpu.matmul %43, %44, %cst_42 {dimension_numbers = #tpu.dot_dimension_numbers<[2], [1], [1], [2], [0, 0, 0, 1, 1, 2], [0], [0]>} : vector<2x1x128xf32>, vector<2x128x128xf32>, vector<2x1x128xf32> -> vector<2x1x128xf32>
    %46 = arith.subf %0, %45 : vector<2x1x128xf32>
    %cst_43 = arith.constant 3.000000e-01 : f32
    %47 = vector.broadcast %cst_43 : f32 to vector<2x1x128xf32>
    %48 = arith.mulf %47, %46 : vector<2x1x128xf32>
    %49 = arith.addf %43, %48 : vector<2x1x128xf32>
    %50 = tpu.concatenate %7, %13, %19, %25, %31, %37, %43, %49 in 1 : vector<2x1x128xf32>, vector<2x1x128xf32>, vector<2x1x128xf32>, vector<2x1x128xf32>, vector<2x1x128xf32>, vector<2x1x128xf32>, vector<2x1x128xf32>, vector<2x1x128xf32> -> vector<2x8x128xf32>
    %c0_44 = arith.constant 0 : index
    %c0_45 = arith.constant 0 : index
    %c0_46 = arith.constant 0 : index
    %51 = vector.load %arg4[%c0_44, %c0_45, %c0_46] : memref<2x8x128xf32, #tpu.memory_space<vmem>>, vector<2x8x128xf32>
    tpu.vector_store %arg4[%c0_44, %c0_45, %c0_46], %50 {strides = array<i32>} : memref<2x8x128xf32, #tpu.memory_space<vmem>>, vector<2x8x128xf32>,
    return
  }
  func.func @transform_0(%arg0: i32) -> (i32, i32, i32) {
    %c0_i32 = arith.constant 0 : i32
    %c0_i32_0 = arith.constant 0 : i32
    %c0_i32_1 = arith.constant 0 : i32
    return %arg0, %c0_i32, %c0_i32_0 : i32, i32, i32
  }
  func.func @transform_1(%arg0: i32) -> (i32, i32, i32) {
    %c0_i32 = arith.constant 0 : i32
    %c0_i32_0 = arith.constant 0 : i32
    %c0_i32_1 = arith.constant 0 : i32
    return %arg0, %c0_i32, %c0_i32_0 : i32, i32, i32
  }
  func.func @transform_2(%arg0: i32) -> (i32, i32, i32) {
    %c0_i32 = arith.constant 0 : i32
    %c0_i32_0 = arith.constant 0 : i32
    %c0_i32_1 = arith.constant 0 : i32
    return %arg0, %c0_i32, %c0_i32_0 : i32, i32, i32
  }
  func.func @transform_3(%arg0: i32) -> (i32, i32, i32) {
    %c0_i32 = arith.constant 0 : i32
    %c0_i32_0 = arith.constant 0 : i32
    %c0_i32_1 = arith.constant 0 : i32
    return %arg0, %c0_i32, %c0_i32_0 : i32, i32, i32
  }
}

</mosaic_0001>

<bundles_post_ra>
// kernel: tpu_custom_call.1
= control target key start
LH: loop header
LB: loop body
LE: loop exit
PB: predicated region body
PF: predicated region fallthrough
CT: control target
= control target key end

     0   :  { %8 = vsyncpa [#allocation3], 0  ;;  %s3029_s0 = inlined_call_operand.hbm [shape: f32[2,128,128], index: 0, kind: input, shape index: {}]   ;;  %s3030_s1 = inlined_call_operand.hbm [shape: f32[2,1,128], index: 1, kind: input, shape index: {}]   ;;  %s3031_s2 = inlined_call_operand.vmem [shape: f32[2,1,128], index: 2, kind: input, shape index: {}]   ;;  %s3032_s3 = inlined_call_operand.hbm [shape: f32[2,8,128], index: 3, kind: output, shape index: {}]  }
   0x1   :  { %9 = vsyncpa [#allocation6], 0 }
   0x2   :  { %10 = vsyncpa [#allocation4], 0  ;;  %s2311_s12 = smov [#allocation2]  }
   0x3   :  { %s16_s13 = sshll.u32 %s2311_s12, 4  ;;  %s17_s13 = int_to_ptr.vmem [resolvable:$true] %s16_s13 }
   0x4   :  { %s2253_s14 = scalar_lea.vmem %s17_s13, 4096  ;;  %p2258_p1 = scmp.lt.s32.totalorder %s17_s13, %s17_s13 }
   0x5   :  { %p2254_p0 = scmp.ne.s32.totalorder %s17_s13, %s2253_s14  ;;  %p2259_p2 = scmp.lt.s32.totalorder %s2253_s14, %s2253_s14 }
   0x7   :  { %p2260_p3 = por %p2259_p2, %p2258_p1 }
   0x9   :  { %p2261_p4 = pnand %p2260_p3, %p2254_p0 }
   0xb   :  { %2264 = shalt.err (!%p2261_p4)
}
   0xc   :  { %s2312_s15 = smov 128   ;;  %s2313_s16 = smov 8  }
   0xd   :  { %22 = dma.hbm_to_vmem [thread:$0]  %s3029_s0, 4096, %s17_s13, [#allocation3], %s2312_s15, %s2312_s15, %s2313_s16  }
   0xe   :  { %s2314_s19 = smov [#allocation5]  }
   0xf   :  { %s28_s20 = sshll.u32 %s2314_s19, 4  ;;  %s29_s20 = int_to_ptr.vmem [resolvable:$true] %s28_s20 }
  0x10   :  { %s2273_s21 = scalar_lea.vmem %s29_s20, 32  ;;  %p2278_p6 = scmp.lt.s32.totalorder %s29_s20, %s29_s20 }
  0x11   :  { %p2274_p5 = scmp.ne.s32.totalorder %s29_s20, %s2273_s21  ;;  %p2279_p7 = scmp.lt.s32.totalorder %s2273_s21, %s2273_s21 }
  0x13   :  { %p2280_p8 = por %p2279_p7, %p2278_p6 }
  0x15   :  { %p2281_p9 = pnand %p2280_p8, %p2274_p5 }
  0x17   :  { %2284 = shalt.err (!%p2281_p9)
}
  0x18   :  { %s2315_s22 = smov 16   ;;  %s2316_s23 = smov 1  }
  0x19   :  { %34 = dma.hbm_to_vmem [thread:$0]  %s3030_s1, 32, %s29_s20, [#allocation6], %s2315_s22, %s2315_s22, %s2316_s23  }
  0x1a   :  { %2305 = dma.done.wait [#allocation3], 4096  }
  0x1b   :  { %2306 = vsyncadd [#allocation3], 4294963200 }
  0x1c   :  { %2307 = dma.done.wait [#allocation6], 32  }
  0x1d   :  { %2308 = vsyncadd [#allocation6], 4294967264  ;;  %v2317_v0 = vmov 0.0   ;;  %vm2318_vm0 = vmmov 0   ;;  %v2355_v1 = vld [vmem:[#allocation2 + $0x78] sm:$0xff]  ;;  %v2359_v3 = vld [vmem:[#allocation2 + $0x70] sm:$0xff] }
  0x1e   :  { %1644 = vmatprep.subr.mxu0 %v2317_v0  ;;  %1679 = vmatprep.subr.mxu1 %v2317_v0  ;;  %v2357_v2 = vld [vmem:[#allocation2 + $0xf8] sm:$0xff]  ;;  %v2363_v4 = vld [vmem:[#allocation2 + $0xf0] sm:$0xff]  ;;  %v2367_v5 = vld [vmem:[#allocation2 + $0x68] sm:$0xff]  ;;  %vm1331_vm1 = vcmask 1040384   ;;  %vm1334_vm2 = vcmask 1041408   ;;  %vm1337_vm3 = vcmask 1042432  }
  0x1f   :  { %1676 = vmatprep.mubr.msk.f32.mxu0 %vm2318_vm0, %v2317_v0  ;;  %1711 = vmatprep.mubr.msk.f32.mxu1 %vm2318_vm0, %v2317_v0  ;;  %v2369_v6 = vld [vmem:[#allocation2 + $0xe8] sm:$0xff]  ;;  %v2375_v7 = vld [vmem:[#allocation2 + $0x60] sm:$0xff]  ;;  %v2383_v9 = vld [vmem:[#allocation2 + $0x58] sm:$0xff]  ;;  %vm1340_vm4 = vcmask 1043456   ;;  %vm1343_vm5 = vcmask 1044480   ;;  %vm1346_vm6 = vcmask 1045504  }
  0x20   :  { %1645 = vmatpush3.msra.mxu0 %v2355_v1  ;;  %1680 = vmatpush3.msra.mxu1 %v2357_v2  ;;  %v2377_v8 = vld [vmem:[#allocation2 + $0xe0] sm:$0xff]  ;;  %v2385_v10 = vld [vmem:[#allocation2 + $0xd8] sm:$0xff]  ;;  %v2391_v11 = vld [vmem:[#allocation2 + $0x50] sm:$0xff]  ;;  %vm1349_vm7 = vcmask 1046528  }
  0x21   :  { %1646 = vmatprep.subr.mxu0 %v2317_v0  ;;  %1681 = vmatprep.subr.mxu1 %v2317_v0  ;;  %v2393_v12 = vld [vmem:[#allocation2 + $0xd0] sm:$0xff]  ;;  %v2399_v13 = vld [vmem:[#allocation2 + $0x48] sm:$0xff]  ;;  %v2407_v15 = vld [vmem:[#allocation2 + $0x40] sm:$0xff] }
  0x22   :  { %1647 = vmatpush3.msra.mxu0 %v2359_v3  ;;  %1682 = vmatpush3.msra.mxu1 %v2363_v4  ;;  %v2401_v14 = vld [vmem:[#allocation2 + $0xc8] sm:$0xff]  ;;  %v2409_v16 = vld [vmem:[#allocation2 + $0xc0] sm:$0xff]  ;;  %v2415_v17 = vld [vmem:[#allocation2 + $0x38] sm:$0xff] }
  0x23   :  { %1648 = vmatprep.subr.mxu0 %v2317_v0  ;;  %1683 = vmatprep.subr.mxu1 %v2317_v0  ;;  %v2417_v18 = vld [vmem:[#allocation2 + $0xb8] sm:$0xff]  ;;  %v2423_v19 = vld [vmem:[#allocation2 + $0x30] sm:$0xff]  ;;  %v2431_v21 = vld [vmem:[#allocation2 + $0x28] sm:$0xff] }
  0x24   :  { %1649 = vmatpush3.msra.mxu0 %v2367_v5  ;;  %1684 = vmatpush3.msra.mxu1 %v2369_v6  ;;  %v2425_v20 = vld [vmem:[#allocation2 + $0xb0] sm:$0xff]  ;;  %v2433_v22 = vld [vmem:[#allocation2 + $0xa8] sm:$0xff]  ;;  %v2439_v23 = vld [vmem:[#allocation2 + $0x20] sm:$0xff] }
  0x25   :  { %1650 = vmatprep.subr.mxu0 %v2317_v0  ;;  %1685 = vmatprep.subr.mxu1 %v2317_v0  ;;  %v2441_v24 = vld [vmem:[#allocation2 + $0xa0] sm:$0xff]  ;;  %v2447_v25 = vld [vmem:[#allocation2 + $0x18] sm:$0xff]  ;;  %v2455_v27 = vld [vmem:[#allocation2 + $0x10] sm:$0xff] }
  0x26   :  { %1651 = vmatpush3.msra.mxu0 %v2375_v7  ;;  %1686 = vmatpush3.msra.mxu1 %v2377_v8  ;;  %v2449_v26 = vld [vmem:[#allocation2 + $0x98] sm:$0xff]  ;;  %v2457_v28 = vld [vmem:[#allocation2 + $0x90] sm:$0xff]  ;;  %v2463_v29 = vld [vmem:[#allocation2 + $0x8] sm:$0xff] }
  0x27   :  { %1652 = vmatprep.subr.mxu0 %v2317_v0  ;;  %1687 = vmatprep.subr.mxu1 %v2317_v0  ;;  %v2465_v30 = vld [vmem:[#allocation2 + $0x88] sm:$0xff]  ;;  %v2471_v31 = vld [vmem:[#allocation2] sm:$0xff] }
  0x28   :  { %1653 = vmatpush3.msra.mxu0 %v2383_v9  ;;  %1688 = vmatpush3.msra.mxu1 %v2385_v10  ;;  %v2473_v32 = vld [vmem:[#allocation2 + $0x80] sm:$0xff] }
  0x29   :  { %1654 = vmatprep.subr.mxu0 %v2317_v0  ;;  %1689 = vmatprep.subr.mxu1 %v2317_v0  ;;  %v2480_v33 = vld [vmem:[%s3031_s2] sm:$0x1]  ;;  %v2485_v34 = vld [vmem:[%s3031_s2 + $0x1] sm:$0x1]  ;;  %s2319_s2 = smov [#allocation7]  }
  0x2a   :  { %1655 = vmatpush3.msra.mxu0 %v2391_v11  ;;  %1690 = vmatpush3.msra.mxu1 %v2393_v12  ;;  %v2563_v35 = vld [vmem:[#allocation5] sm:$0x1]  ;;  %v2565_v36 = vld [vmem:[#allocation5 + $0x1] sm:$0x1]  ;;  %s1359_s28 = sshll.u32 %s2319_s2, 4  ;;  %s1360_s28 = int_to_ptr.vmem [resolvable:$true] %s1359_s28 }
  0x2b   :  { %1656 = vmatprep.subr.mxu0 %v2317_v0  ;;  %1691 = vmatprep.subr.mxu1 %v2317_v0  ;;  %s2285_s29 = scalar_lea.vmem %s1360_s28, 256  ;;  %p2290_p11 = scmp.lt.s32.totalorder %s1360_s28, %s1360_s28 }
  0x2c   :  { %1657 = vmatpush3.msra.mxu0 %v2399_v13  ;;  %1692 = vmatpush3.msra.mxu1 %v2401_v14  ;;  %p2286_p10 = scmp.ne.s32.totalorder %s1360_s28, %s2285_s29  ;;  %p2291_p12 = scmp.lt.s32.totalorder %s2285_s29, %s2285_s29 }
  0x2d   :  { %1658 = vmatprep.subr.mxu0 %v2317_v0  ;;  %1693 = vmatprep.subr.mxu1 %v2317_v0 }
  0x2e   :  { %1659 = vmatpush3.msra.mxu0 %v2407_v15  ;;  %1694 = vmatpush3.msra.mxu1 %v2409_v16  ;;  %p2292_p13 = por %p2291_p12, %p2290_p11 }
  0x2f   :  { %1660 = vmatprep.subr.mxu0 %v2317_v0  ;;  %1695 = vmatprep.subr.mxu1 %v2317_v0 }
  0x30   :  { %1661 = vmatpush3.msra.mxu0 %v2415_v17  ;;  %1696 = vmatpush3.msra.mxu1 %v2417_v18  ;;  %p2293_p0 = pnand %p2292_p13, %p2286_p10 }
  0x31   :  { %1662 = vmatprep.subr.mxu0 %v2317_v0  ;;  %1697 = vmatprep.subr.mxu1 %v2317_v0 }
  0x32   :  { %1663 = vmatpush3.msra.mxu0 %v2423_v19  ;;  %1698 = vmatpush3.msra.mxu1 %v2425_v20 }
  0x33   :  { %1664 = vmatprep.subr.mxu0 %v2317_v0  ;;  %1699 = vmatprep.subr.mxu1 %v2317_v0 }
  0x34   :  { %1665 = vmatpush3.msra.mxu0 %v2431_v21  ;;  %1700 = vmatpush3.msra.mxu1 %v2433_v22 }
  0x35   :  { %1666 = vmatprep.subr.mxu0 %v2317_v0  ;;  %1701 = vmatprep.subr.mxu1 %v2317_v0 }
  0x36   :  { %1667 = vmatpush3.msra.mxu0 %v2439_v23  ;;  %1702 = vmatpush3.msra.mxu1 %v2441_v24 }
  0x37   :  { %1668 = vmatprep.subr.mxu0 %v2317_v0  ;;  %1703 = vmatprep.subr.mxu1 %v2317_v0 }
  0x38   :  { %1669 = vmatpush3.msra.mxu0 %v2447_v25  ;;  %1704 = vmatpush3.msra.mxu1 %v2449_v26 }
  0x39   :  { %1670 = vmatprep.subr.mxu0 %v2317_v0  ;;  %1705 = vmatprep.subr.mxu1 %v2317_v0 }
  0x3a   :  { %1671 = vmatpush3.msra.mxu0 %v2455_v27  ;;  %1706 = vmatpush3.msra.mxu1 %v2457_v28 }
  0x3b   :  { %1672 = vmatprep.subr.mxu0 %v2317_v0  ;;  %1707 = vmatprep.subr.mxu1 %v2317_v0 }
  0x3c   :  { %1673 = vmatpush3.msra.mxu0 %v2463_v29  ;;  %1708 = vmatpush3.msra.mxu1 %v2465_v30 }
  0x3d   :  { %1674 = vmatprep.subr.mxu0 %v2317_v0  ;;  %1709 = vmatprep.subr.mxu1 %v2317_v0 }
  0x3e   :  { %1675 = vmatpush3.msra.mxu0 %v2471_v31  ;;  %1710 = vmatpush3.msra.mxu1 %v2473_v32 }
  0x3f   :  { %1677 = vmatmul.mubr.f32.vlgmr.msra.gmra.mxu0 %v2480_v33  ;;  %1712 = vmatmul.mubr.f32.vlgmr.msra.gmra.mxu1 %v2485_v34 }
  0x40   :  { %1714 = vmatprep.subr.mxu0 %v2317_v0  ;;  %1749 = vmatprep.subr.mxu1 %v2317_v0 }
  0x41   :  { %1715 = vmatpush3.msra.mxu0 %v2355_v1  ;;  %1750 = vmatpush3.msra.mxu1 %v2357_v2 }
  0x42   :  { %1716 = vmatprep.subr.mxu0 %v2317_v0  ;;  %1751 = vmatprep.subr.mxu1 %v2317_v0 }
  0x43   :  { %1717 = vmatpush3.msra.mxu0 %v2359_v3  ;;  %1752 = vmatpush3.msra.mxu1 %v2363_v4 }
  0x44   :  { %1718 = vmatprep.subr.mxu0 %v2317_v0  ;;  %1753 = vmatprep.subr.mxu1 %v2317_v0 }
  0x45   :  { %1719 = vmatpush3.msra.mxu0 %v2367_v5  ;;  %1754 = vmatpush3.msra.mxu1 %v2369_v6 }
  0x46   :  { %1720 = vmatprep.subr.mxu0 %v2317_v0  ;;  %1755 = vmatprep.subr.mxu1 %v2317_v0 }
  0x47   :  { %1721 = vmatpush3.msra.mxu0 %v2375_v7  ;;  %1756 = vmatpush3.msra.mxu1 %v2377_v8 }
  0x48   :  { %1722 = vmatprep.subr.mxu0 %v2317_v0  ;;  %1757 = vmatprep.subr.mxu1 %v2317_v0 }
  0x49   :  { %1723 = vmatpush3.msra.mxu0 %v2383_v9  ;;  %1758 = vmatpush3.msra.mxu1 %v2385_v10 }
  0x4a   :  { %1724 = vmatprep.subr.mxu0 %v2317_v0  ;;  %1759 = vmatprep.subr.mxu1 %v2317_v0 }
  0x4b   :  { %1725 = vmatpush3.msra.mxu0 %v2391_v11  ;;  %1760 = vmatpush3.msra.mxu1 %v2393_v12 }
  0x4c   :  { %1726 = vmatprep.subr.mxu0 %v2317_v0  ;;  %1761 = vmatprep.subr.mxu1 %v2317_v0 }
  0x4d   :  { %1727 = vmatpush3.msra.mxu0 %v2399_v13  ;;  %1762 = vmatpush3.msra.mxu1 %v2401_v14 }
  0x4e   :  { %1728 = vmatprep.subr.mxu0 %v2317_v0  ;;  %1763 = vmatprep.subr.mxu1 %v2317_v0 }
  0x4f   :  { %1729 = vmatpush3.msra.mxu0 %v2407_v15  ;;  %1764 = vmatpush3.msra.mxu1 %v2409_v16 }
  0x50   :  { %1730 = vmatprep.subr.mxu0 %v2317_v0  ;;  %1765 = vmatprep.subr.mxu1 %v2317_v0 }
  0x51   :  { %1731 = vmatpush3.msra.mxu0 %v2415_v17  ;;  %1766 = vmatpush3.msra.mxu1 %v2417_v18 }
  0x52   :  { %1732 = vmatprep.subr.mxu0 %v2317_v0  ;;  %1767 = vmatprep.subr.mxu1 %v2317_v0 }
  0x53   :  { %1733 = vmatpush3.msra.mxu0 %v2423_v19  ;;  %1768 = vmatpush3.msra.mxu1 %v2425_v20 }
  0x54   :  { %1734 = vmatprep.subr.mxu0 %v2317_v0  ;;  %1769 = vmatprep.subr.mxu1 %v2317_v0 }
  0x55   :  { %1735 = vmatpush3.msra.mxu0 %v2431_v21  ;;  %1770 = vmatpush3.msra.mxu1 %v2433_v22 }
  0x56   :  { %1736 = vmatprep.subr.mxu0 %v2317_v0  ;;  %1771 = vmatprep.subr.mxu1 %v2317_v0 }
  0x57   :  { %1737 = vmatpush3.msra.mxu0 %v2439_v23  ;;  %1772 = vmatpush3.msra.mxu1 %v2441_v24 }
  0x58   :  { %1738 = vmatprep.subr.mxu0 %v2317_v0  ;;  %1773 = vmatprep.subr.mxu1 %v2317_v0 }
  0x59   :  { %1739 = vmatpush3.msra.mxu0 %v2447_v25  ;;  %1774 = vmatpush3.msra.mxu1 %v2449_v26 }
  0x5a   :  { %1740 = vmatprep.subr.mxu0 %v2317_v0  ;;  %1775 = vmatprep.subr.mxu1 %v2317_v0 }
  0x5b   :  { %1741 = vmatpush3.msra.mxu0 %v2455_v27  ;;  %1776 = vmatpush3.msra.mxu1 %v2457_v28 }
  0x5c   :  { %1742 = vmatprep.subr.mxu0 %v2317_v0  ;;  %1777 = vmatprep.subr.mxu1 %v2317_v0 }
  0x5d   :  { %1743 = vmatpush3.msra.mxu0 %v2463_v29  ;;  %1778 = vmatpush3.msra.mxu1 %v2465_v30 }
  0x5e   :  { %1744 = vmatprep.subr.mxu0 %v2317_v0  ;;  %1779 = vmatprep.subr.mxu1 %v2317_v0 }
  0x5f   :  { %1745 = vmatpush3.msra.mxu0 %v2471_v31  ;;  %1746 = vmatprep.mubr.msk.f32.mxu0 %vm2318_vm0, %v2317_v0 }
  0x60   :  { %1780 = vmatpush3.msra.mxu1 %v2473_v32  ;;  %1781 = vmatprep.mubr.msk.f32.mxu1 %vm2318_vm0, %v2317_v0 }
  0x61   :  { %1784 = vmatprep.subr.mxu0 %v2317_v0  ;;  %1819 = vmatprep.subr.mxu1 %v2317_v0 }
  0xff   :  { %v145_v37 = vpop.f32.mrf.mxu0  ;;  %v215_v38 = vpop.f32.mrf.mxu1 }
 0x100   :  { %v219_v39 = vsub.f32 %v2563_v35, %v145_v37  ;;  %v220_v40 = vsub.f32 %v2565_v36, %v215_v38 }
 0x101   :  { %v1678_v41 = vpop.f32.mrf.mxu0  ;;  %v1713_v42 = vpop.f32.mrf.mxu1 }
 0x102   :  { %v221_v43 = vmul.f32 0.3, %v219_v39  ;;  %v222_v44 = vmul.f32 0.3, %v220_v40 }
 0x104   :  { %v2570_v45 = vadd.f32 %v221_v43, %v2480_v33  ;;  %v2573_v46 = vadd.f32 %v222_v44, %v2485_v34 }
 0x106   :  { %1747 = vmatmul.mubr.f32.vlgmr.msra.gmra.mxu0 %v2570_v45  ;;  %1782 = vmatmul.mubr.f32.vlgmr.msra.gmra.mxu1 %v2573_v46 }
 0x107   :  { %1785 = vmatpush3.msra.mxu0 %v2355_v1  ;;  %1820 = vmatpush3.msra.mxu1 %v2357_v2 }
 0x108   :  { %1786 = vmatprep.subr.mxu0 %v2317_v0  ;;  %1821 = vmatprep.subr.mxu1 %v2317_v0 }
 0x109   :  { %1787 = vmatpush3.msra.mxu0 %v2359_v3  ;;  %1822 = vmatpush3.msra.mxu1 %v2363_v4 }
 0x10a   :  { %1788 = vmatprep.subr.mxu0 %v2317_v0  ;;  %1823 = vmatprep.subr.mxu1 %v2317_v0 }
 0x10b   :  { %1789 = vmatpush3.msra.mxu0 %v2367_v5  ;;  %1824 = vmatpush3.msra.mxu1 %v2369_v6 }
 0x10c   :  { %1790 = vmatprep.subr.mxu0 %v2317_v0  ;;  %1825 = vmatprep.subr.mxu1 %v2317_v0 }
 0x10d   :  { %1791 = vmatpush3.msra.mxu0 %v2375_v7  ;;  %1826 = vmatpush3.msra.mxu1 %v2377_v8 }
 0x10e   :  { %1792 = vmatprep.subr.mxu0 %v2317_v0  ;;  %1827 = vmatprep.subr.mxu1 %v2317_v0 }
 0x10f   :  { %1793 = vmatpush3.msra.mxu0 %v2383_v9  ;;  %1828 = vmatpush3.msra.mxu1 %v2385_v10 }
 0x110   :  { %1794 = vmatprep.subr.mxu0 %v2317_v0  ;;  %1829 = vmatprep.subr.mxu1 %v2317_v0 }
 0x111   :  { %1795 = vmatpush3.msra.mxu0 %v2391_v11  ;;  %1830 = vmatpush3.msra.mxu1 %v2393_v12 }
 0x112   :  { %1796 = vmatprep.subr.mxu0 %v2317_v0  ;;  %1831 = vmatprep.subr.mxu1 %v2317_v0 }
 0x113   :  { %1797 = vmatpush3.msra.mxu0 %v2399_v13  ;;  %1832 = vmatpush3.msra.mxu1 %v2401_v14 }
 0x114   :  { %1798 = vmatprep.subr.mxu0 %v2317_v0  ;;  %1833 = vmatprep.subr.mxu1 %v2317_v0 }
 0x115   :  { %1799 = vmatpush3.msra.mxu0 %v2407_v15  ;;  %1834 = vmatpush3.msra.mxu1 %v2409_v16 }
 0x116   :  { %1800 = vmatprep.subr.mxu0 %v2317_v0  ;;  %1835 = vmatprep.subr.mxu1 %v2317_v0 }
 0x117   :  { %1801 = vmatpush3.msra.mxu0 %v2415_v17  ;;  %1836 = vmatpush3.msra.mxu1 %v2417_v18 }
 0x118   :  { %1802 = vmatprep.subr.mxu0 %v2317_v0  ;;  %1837 = vmatprep.subr.mxu1 %v2317_v0 }
 0x119   :  { %1803 = vmatpush3.msra.mxu0 %v2423_v19  ;;  %1838 = vmatpush3.msra.mxu1 %v2425_v20 }
 0x11a   :  { %1804 = vmatprep.subr.mxu0 %v2317_v0  ;;  %1839 = vmatprep.subr.mxu1 %v2317_v0 }
 0x11b   :  { %1805 = vmatpush3.msra.mxu0 %v2431_v21  ;;  %1840 = vmatpush3.msra.mxu1 %v2433_v22 }
 0x11c   :  { %1806 = vmatprep.subr.mxu0 %v2317_v0  ;;  %1841 = vmatprep.subr.mxu1 %v2317_v0 }
 0x11d   :  { %1807 = vmatpush3.msra.mxu0 %v2439_v23  ;;  %1842 = vmatpush3.msra.mxu1 %v2441_v24 }
 0x11e   :  { %1808 = vmatprep.subr.mxu0 %v2317_v0  ;;  %1843 = vmatprep.subr.mxu1 %v2317_v0 }
 0x11f   :  { %1809 = vmatpush3.msra.mxu0 %v2447_v25  ;;  %1844 = vmatpush3.msra.mxu1 %v2449_v26 }
 0x120   :  { %1810 = vmatprep.subr.mxu0 %v2317_v0  ;;  %1845 = vmatprep.subr.mxu1 %v2317_v0 }
 0x121   :  { %1811 = vmatpush3.msra.mxu0 %v2455_v27  ;;  %1846 = vmatpush3.msra.mxu1 %v2457_v28 }
 0x122   :  { %1812 = vmatprep.subr.mxu0 %v2317_v0  ;;  %1847 = vmatprep.subr.mxu1 %v2317_v0 }
 0x123   :  { %1813 = vmatpush3.msra.mxu0 %v2463_v29  ;;  %1848 = vmatpush3.msra.mxu1 %v2465_v30 }
 0x124   :  { %1814 = vmatprep.subr.mxu0 %v2317_v0  ;;  %1849 = vmatprep.subr.mxu1 %v2317_v0 }
 0x125   :  { %1815 = vmatpush3.msra.mxu0 %v2471_v31  ;;  %1816 = vmatprep.mubr.msk.f32.mxu0 %vm2318_vm0, %v2317_v0 }
 0x126   :  { %1850 = vmatpush3.msra.mxu1 %v2473_v32  ;;  %1851 = vmatprep.mubr.msk.f32.mxu1 %vm2318_vm0, %v2317_v0 }
 0x127   :  { %1854 = vmatprep.subr.mxu0 %v2317_v0  ;;  %1889 = vmatprep.subr.mxu1 %v2317_v0 }
 0x1c6   :  { %v291_v47 = vpop.f32.mrf.mxu0  ;;  %v361_v48 = vpop.f32.mrf.mxu1 }
 0x1c7   :  { %v365_v49 = vsub.f32 %v2563_v35, %v291_v47  ;;  %v366_v50 = vsub.f32 %v2565_v36, %v361_v48 }
 0x1c8   :  { %v1748_v51 = vpop.f32.mrf.mxu0  ;;  %v1783_v52 = vpop.f32.mrf.mxu1 }
 0x1c9   :  { %v367_v53 = vmul.f32 0.3, %v365_v49  ;;  %v368_v54 = vmul.f32 0.3, %v366_v50 }
 0x1cb   :  { %v2648_v55 = vadd.f32 %v367_v53, %v2570_v45  ;;  %v2651_v56 = vadd.f32 %v368_v54, %v2573_v46 }
 0x1cd   :  { %1817 = vmatmul.mubr.f32.vlgmr.msra.gmra.mxu0 %v2648_v55  ;;  %1852 = vmatmul.mubr.f32.vlgmr.msra.gmra.mxu1 %v2651_v56 }
 0x1ce   :  { %1855 = vmatpush3.msra.mxu0 %v2355_v1  ;;  %1890 = vmatpush3.msra.mxu1 %v2357_v2 }
 0x1cf   :  { %1856 = vmatprep.subr.mxu0 %v2317_v0  ;;  %1891 = vmatprep.subr.mxu1 %v2317_v0 }
 0x1d0   :  { %1857 = vmatpush3.msra.mxu0 %v2359_v3  ;;  %1892 = vmatpush3.msra.mxu1 %v2363_v4 }
 0x1d1   :  { %1858 = vmatprep.subr.mxu0 %v2317_v0  ;;  %1893 = vmatprep.subr.mxu1 %v2317_v0 }
 0x1d2   :  { %1859 = vmatpush3.msra.mxu0 %v2367_v5  ;;  %1894 = vmatpush3.msra.mxu1 %v2369_v6 }
 0x1d3   :  { %1860 = vmatprep.subr.mxu0 %v2317_v0  ;;  %1895 = vmatprep.subr.mxu1 %v2317_v0 }
 0x1d4   :  { %1861 = vmatpush3.msra.mxu0 %v2375_v7  ;;  %1896 = vmatpush3.msra.mxu1 %v2377_v8 }
 0x1d5   :  { %1862 = vmatprep.subr.mxu0 %v2317_v0  ;;  %1897 = vmatprep.subr.mxu1 %v2317_v0 }
 0x1d6   :  { %1863 = vmatpush3.msra.mxu0 %v2383_v9  ;;  %1898 = vmatpush3.msra.mxu1 %v2385_v10 }
 0x1d7   :  { %1864 = vmatprep.subr.mxu0 %v2317_v0  ;;  %1899 = vmatprep.subr.mxu1 %v2317_v0 }
 0x1d8   :  { %1865 = vmatpush3.msra.mxu0 %v2391_v11  ;;  %1900 = vmatpush3.msra.mxu1 %v2393_v12 }
 0x1d9   :  { %1866 = vmatprep.subr.mxu0 %v2317_v0  ;;  %1901 = vmatprep.subr.mxu1 %v2317_v0 }
 0x1da   :  { %1867 = vmatpush3.msra.mxu0 %v2399_v13  ;;  %1902 = vmatpush3.msra.mxu1 %v2401_v14 }
 0x1db   :  { %1868 = vmatprep.subr.mxu0 %v2317_v0  ;;  %1903 = vmatprep.subr.mxu1 %v2317_v0 }
 0x1dc   :  { %1869 = vmatpush3.msra.mxu0 %v2407_v15  ;;  %1904 = vmatpush3.msra.mxu1 %v2409_v16 }
 0x1dd   :  { %1870 = vmatprep.subr.mxu0 %v2317_v0  ;;  %1905 = vmatprep.subr.mxu1 %v2317_v0 }
 0x1de   :  { %1871 = vmatpush3.msra.mxu0 %v2415_v17  ;;  %1906 = vmatpush3.msra.mxu1 %v2417_v18 }
 0x1df   :  { %1872 = vmatprep.subr.mxu0 %v2317_v0  ;;  %1907 = vmatprep.subr.mxu1 %v2317_v0 }
 0x1e0   :  { %1873 = vmatpush3.msra.mxu0 %v2423_v19  ;;  %1908 = vmatpush3.msra.mxu1 %v2425_v20 }
 0x1e1   :  { %1874 = vmatprep.subr.mxu0 %v2317_v0  ;;  %1909 = vmatprep.subr.mxu1 %v2317_v0 }
 0x1e2   :  { %1875 = vmatpush3.msra.mxu0 %v2431_v21  ;;  %1910 = vmatpush3.msra.mxu1 %v2433_v22 }
 0x1e3   :  { %1876 = vmatprep.subr.mxu0 %v2317_v0  ;;  %1911 = vmatprep.subr.mxu1 %v2317_v0 }
 0x1e4   :  { %1877 = vmatpush3.msra.mxu0 %v2439_v23  ;;  %1912 = vmatpush3.msra.mxu1 %v2441_v24 }
 0x1e5   :  { %1878 = vmatprep.subr.mxu0 %v2317_v0  ;;  %1913 = vmatprep.subr.mxu1 %v2317_v0 }
 0x1e6   :  { %1879 = vmatpush3.msra.mxu0 %v2447_v25  ;;  %1914 = vmatpush3.msra.mxu1 %v2449_v26 }
 0x1e7   :  { %1880 = vmatprep.subr.mxu0 %v2317_v0  ;;  %1915 = vmatprep.subr.mxu1 %v2317_v0 }
 0x1e8   :  { %1881 = vmatpush3.msra.mxu0 %v2455_v27  ;;  %1916 = vmatpush3.msra.mxu1 %v2457_v28 }
 0x1e9   :  { %1882 = vmatprep.subr.mxu0 %v2317_v0  ;;  %1917 = vmatprep.subr.mxu1 %v2317_v0 }
 0x1ea   :  { %1883 = vmatpush3.msra.mxu0 %v2463_v29  ;;  %1918 = vmatpush3.msra.mxu1 %v2465_v30 }
 0x1eb   :  { %1884 = vmatprep.subr.mxu0 %v2317_v0  ;;  %1919 = vmatprep.subr.mxu1 %v2317_v0 }
 0x1ec   :  { %1885 = vmatpush3.msra.mxu0 %v2471_v31  ;;  %1886 = vmatprep.mubr.msk.f32.mxu0 %vm2318_vm0, %v2317_v0 }
 0x1ed   :  { %1920 = vmatpush3.msra.mxu1 %v2473_v32  ;;  %1921 = vmatprep.mubr.msk.f32.mxu1 %vm2318_vm0, %v2317_v0 }
 0x1ee   :  { %1924 = vmatprep.subr.mxu0 %v2317_v0  ;;  %1959 = vmatprep.subr.mxu1 %v2317_v0 }
 0x28d   :  { %v437_v57 = vpop.f32.mrf.mxu0  ;;  %v507_v58 = vpop.f32.mrf.mxu1 }
 0x28e   :  { %v511_v59 = vsub.f32 %v2563_v35, %v437_v57  ;;  %v512_v60 = vsub.f32 %v2565_v36, %v507_v58 }
 0x28f   :  { %v1818_v61 = vpop.f32.mrf.mxu0  ;;  %v1853_v62 = vpop.f32.mrf.mxu1 }
 0x290   :  { %v513_v63 = vmul.f32 0.3, %v511_v59  ;;  %v514_v33 = vmul.f32 0.3, %v512_v60  ;;  %v2235_v62 = vld [vmem:[#allocation2 + $0x20] sm:$0xff] }
 0x292   :  { %v2726_v34 = vadd.f32 %v513_v63, %v2648_v55  ;;  %v2729_v37 = vadd.f32 %v514_v33, %v2651_v56  ;;  %v2236_v63 = vld [vmem:[#allocation2 + $0xa0] sm:$0xff]  ;;  %v2237_v33 = vld [vmem:[#allocation2 + $0x18] sm:$0xff] }
 0x294   :  { %1887 = vmatmul.mubr.f32.vlgmr.msra.gmra.mxu0 %v2726_v34  ;;  %1922 = vmatmul.mubr.f32.vlgmr.msra.gmra.mxu1 %v2729_v37 }
 0x295   :  { %1925 = vmatpush3.msra.mxu0 %v2355_v1  ;;  %1960 = vmatpush3.msra.mxu1 %v2357_v2 }
 0x296   :  { %1926 = vmatprep.subr.mxu0 %v2317_v0  ;;  %1961 = vmatprep.subr.mxu1 %v2317_v0 }
 0x297   :  { %1927 = vmatpush3.msra.mxu0 %v2359_v3  ;;  %1962 = vmatpush3.msra.mxu1 %v2363_v4 }
 0x298   :  { %1928 = vmatprep.subr.mxu0 %v2317_v0  ;;  %1963 = vmatprep.subr.mxu1 %v2317_v0 }
 0x299   :  { %1929 = vmatpush3.msra.mxu0 %v2367_v5  ;;  %1964 = vmatpush3.msra.mxu1 %v2369_v6 }
 0x29a   :  { %1930 = vmatprep.subr.mxu0 %v2317_v0  ;;  %1965 = vmatprep.subr.mxu1 %v2317_v0 }
 0x29b   :  { %1931 = vmatpush3.msra.mxu0 %v2375_v7  ;;  %1966 = vmatpush3.msra.mxu1 %v2377_v8 }
 0x29c   :  { %1932 = vmatprep.subr.mxu0 %v2317_v0  ;;  %1967 = vmatprep.subr.mxu1 %v2317_v0 }
 0x29d   :  { %1933 = vmatpush3.msra.mxu0 %v2383_v9  ;;  %1968 = vmatpush3.msra.mxu1 %v2385_v10 }
 0x29e   :  { %1934 = vmatprep.subr.mxu0 %v2317_v0  ;;  %1969 = vmatprep.subr.mxu1 %v2317_v0 }
 0x29f   :  { %1935 = vmatpush3.msra.mxu0 %v2391_v11  ;;  %1970 = vmatpush3.msra.mxu1 %v2393_v12 }
 0x2a0   :  { %1936 = vmatprep.subr.mxu0 %v2317_v0  ;;  %1971 = vmatprep.subr.mxu1 %v2317_v0 }
 0x2a1   :  { %1937 = vmatpush3.msra.mxu0 %v2399_v13  ;;  %1972 = vmatpush3.msra.mxu1 %v2401_v14 }
 0x2a2   :  { %1938 = vmatprep.subr.mxu0 %v2317_v0  ;;  %1973 = vmatprep.subr.mxu1 %v2317_v0 }
 0x2a3   :  { %1939 = vmatpush3.msra.mxu0 %v2407_v15  ;;  %1974 = vmatpush3.msra.mxu1 %v2409_v16 }
 0x2a4   :  { %1940 = vmatprep.subr.mxu0 %v2317_v0  ;;  %1975 = vmatprep.subr.mxu1 %v2317_v0 }
 0x2a5   :  { %1941 = vmatpush3.msra.mxu0 %v2415_v17  ;;  %1976 = vmatpush3.msra.mxu1 %v2417_v18 }
 0x2a6   :  { %1942 = vmatprep.subr.mxu0 %v2317_v0  ;;  %1977 = vmatprep.subr.mxu1 %v2317_v0 }
 0x2a7   :  { %1943 = vmatpush3.msra.mxu0 %v2423_v19  ;;  %1978 = vmatpush3.msra.mxu1 %v2425_v20 }
 0x2a8   :  { %1944 = vmatprep.subr.mxu0 %v2317_v0  ;;  %1979 = vmatprep.subr.mxu1 %v2317_v0 }
 0x2a9   :  { %1945 = vmatpush3.msra.mxu0 %v2431_v21  ;;  %1980 = vmatpush3.msra.mxu1 %v2433_v22 }
 0x2aa   :  { %1946 = vmatprep.subr.mxu0 %v2317_v0  ;;  %1981 = vmatprep.subr.mxu1 %v2317_v0 }
 0x2ab   :  { %1947 = vmatpush3.msra.mxu0 %v2439_v23  ;;  %1982 = vmatpush3.msra.mxu1 %v2441_v24 }
 0x2ac   :  { %1948 = vmatprep.subr.mxu0 %v2317_v0  ;;  %1983 = vmatprep.subr.mxu1 %v2317_v0 }
 0x2ad   :  { %1949 = vmatpush3.msra.mxu0 %v2447_v25  ;;  %1984 = vmatpush3.msra.mxu1 %v2449_v26 }
 0x2ae   :  { %1950 = vmatprep.subr.mxu0 %v2317_v0  ;;  %1985 = vmatprep.subr.mxu1 %v2317_v0 }
 0x2af   :  { %1951 = vmatpush3.msra.mxu0 %v2455_v27  ;;  %1986 = vmatpush3.msra.mxu1 %v2457_v28 }
 0x2b0   :  { %1952 = vmatprep.subr.mxu0 %v2317_v0  ;;  %1987 = vmatprep.subr.mxu1 %v2317_v0 }
 0x2b1   :  { %1953 = vmatpush3.msra.mxu0 %v2463_v29  ;;  %1988 = vmatpush3.msra.mxu1 %v2465_v30 }
 0x2b2   :  { %1954 = vmatprep.subr.mxu0 %v2317_v0  ;;  %1989 = vmatprep.subr.mxu1 %v2317_v0 }
 0x2b3   :  { %1955 = vmatpush3.msra.mxu0 %v2471_v31  ;;  %1956 = vmatprep.mubr.msk.f32.mxu0 %vm2318_vm0, %v2317_v0 }
 0x2b4   :  { %1990 = vmatpush3.msra.mxu1 %v2473_v32  ;;  %1991 = vmatprep.mubr.msk.f32.mxu1 %vm2318_vm0, %v2317_v0 }
 0x2b5   :  { %1994 = vmatprep.subr.mxu0 %v2317_v0  ;;  %2029 = vmatprep.subr.mxu1 %v2317_v0 }
 0x354   :  { %v583_v38 = vpop.f32.mrf.mxu0  ;;  %v653_v39 = vpop.f32.mrf.mxu1 }
 0x355   :  { %v657_v40 = vsub.f32 %v2563_v35, %v583_v38  ;;  %v658_v41 = vsub.f32 %v2565_v36, %v653_v39  ;;  %v2238_v38 = vld [vmem:[#allocation2 + $0x98] sm:$0xff]  ;;  %v2239_v39 = vld [vmem:[#allocation2 + $0x10] sm:$0xff] }
 0x356   :  { %v1888_v42 = vpop.f32.mrf.mxu0  ;;  %v1923_v43 = vpop.f32.mrf.mxu1 }
 0x357   :  { %v659_v44 = vmul.f32 0.3, %v657_v40  ;;  %v660_v47 = vmul.f32 0.3, %v658_v41  ;;  %v2240_v40 = vld [vmem:[#allocation2 + $0x90] sm:$0xff]  ;;  %v2241_v41 = vld [vmem:[#allocation2 + $0x8] sm:$0xff] }
 0x358   :  { %v2242_v42 = vld [vmem:[#allocation2 + $0x88] sm:$0xff]  ;;  %v2243_v43 = vld [vmem:[#allocation2] sm:$0xff] }
 0x359   :  { %v2804_v48 = vadd.f32 %v659_v44, %v2726_v34  ;;  %v2807_v49 = vadd.f32 %v660_v47, %v2729_v37  ;;  %v2244_v44 = vld [vmem:[#allocation2 + $0x80] sm:$0xff] }
 0x35b   :  { %1957 = vmatmul.mubr.f32.vlgmr.msra.gmra.mxu0 %v2804_v48  ;;  %1992 = vmatmul.mubr.f32.vlgmr.msra.gmra.mxu1 %v2807_v49 }
 0x35c   :  { %1995 = vmatpush3.msra.mxu0 %v2355_v1  ;;  %2030 = vmatpush3.msra.mxu1 %v2357_v2 }
 0x35d   :  { %1996 = vmatprep.subr.mxu0 %v2317_v0  ;;  %2031 = vmatprep.subr.mxu1 %v2317_v0 }
 0x35e   :  { %1997 = vmatpush3.msra.mxu0 %v2359_v3  ;;  %2032 = vmatpush3.msra.mxu1 %v2363_v4 }
 0x35f   :  { %1998 = vmatprep.subr.mxu0 %v2317_v0  ;;  %2033 = vmatprep.subr.mxu1 %v2317_v0 }
 0x360   :  { %1999 = vmatpush3.msra.mxu0 %v2367_v5  ;;  %2034 = vmatpush3.msra.mxu1 %v2369_v6 }
 0x361   :  { %2000 = vmatprep.subr.mxu0 %v2317_v0  ;;  %2035 = vmatprep.subr.mxu1 %v2317_v0 }
 0x362   :  { %2001 = vmatpush3.msra.mxu0 %v2375_v7  ;;  %2036 = vmatpush3.msra.mxu1 %v2377_v8 }
 0x363   :  { %2002 = vmatprep.subr.mxu0 %v2317_v0  ;;  %2037 = vmatprep.subr.mxu1 %v2317_v0 }
 0x364   :  { %2003 = vmatpush3.msra.mxu0 %v2383_v9  ;;  %2038 = vmatpush3.msra.mxu1 %v2385_v10 }
 0x365   :  { %2004 = vmatprep.subr.mxu0 %v2317_v0  ;;  %2039 = vmatprep.subr.mxu1 %v2317_v0 }
 0x366   :  { %2005 = vmatpush3.msra.mxu0 %v2391_v11  ;;  %2040 = vmatpush3.msra.mxu1 %v2393_v12 }
 0x367   :  { %2006 = vmatprep.subr.mxu0 %v2317_v0  ;;  %2041 = vmatprep.subr.mxu1 %v2317_v0 }
 0x368   :  { %2007 = vmatpush3.msra.mxu0 %v2399_v13  ;;  %2042 = vmatpush3.msra.mxu1 %v2401_v14 }
 0x369   :  { %2008 = vmatprep.subr.mxu0 %v2317_v0  ;;  %2043 = vmatprep.subr.mxu1 %v2317_v0 }
 0x36a   :  { %2009 = vmatpush3.msra.mxu0 %v2407_v15  ;;  %2044 = vmatpush3.msra.mxu1 %v2409_v16 }
 0x36b   :  { %2010 = vmatprep.subr.mxu0 %v2317_v0  ;;  %2045 = vmatprep.subr.mxu1 %v2317_v0 }
 0x36c   :  { %2011 = vmatpush3.msra.mxu0 %v2415_v17  ;;  %2046 = vmatpush3.msra.mxu1 %v2417_v18 }
 0x36d   :  { %2012 = vmatprep.subr.mxu0 %v2317_v0  ;;  %2047 = vmatprep.subr.mxu1 %v2317_v0 }
 0x36e   :  { %2013 = vmatpush3.msra.mxu0 %v2423_v19  ;;  %2048 = vmatpush3.msra.mxu1 %v2425_v20 }
 0x36f   :  { %2014 = vmatprep.subr.mxu0 %v2317_v0  ;;  %2049 = vmatprep.subr.mxu1 %v2317_v0 }
 0x370   :  { %2015 = vmatpush3.msra.mxu0 %v2431_v21  ;;  %2050 = vmatpush3.msra.mxu1 %v2433_v22 }
 0x371   :  { %2016 = vmatprep.subr.mxu0 %v2317_v0  ;;  %2051 = vmatprep.subr.mxu1 %v2317_v0 }
 0x372   :  { %2017 = vmatpush3.msra.mxu0 %v2439_v23  ;;  %2052 = vmatpush3.msra.mxu1 %v2441_v24 }
 0x373   :  { %2018 = vmatprep.subr.mxu0 %v2317_v0  ;;  %2053 = vmatprep.subr.mxu1 %v2317_v0 }
 0x374   :  { %2019 = vmatpush3.msra.mxu0 %v2447_v25  ;;  %2054 = vmatpush3.msra.mxu1 %v2449_v26 }
 0x375   :  { %2020 = vmatprep.subr.mxu0 %v2317_v0  ;;  %2055 = vmatprep.subr.mxu1 %v2317_v0 }
 0x376   :  { %2021 = vmatpush3.msra.mxu0 %v2455_v27  ;;  %2056 = vmatpush3.msra.mxu1 %v2457_v28 }
 0x377   :  { %2022 = vmatprep.subr.mxu0 %v2317_v0  ;;  %2057 = vmatprep.subr.mxu1 %v2317_v0 }
 0x378   :  { %2023 = vmatpush3.msra.mxu0 %v2463_v29  ;;  %2058 = vmatpush3.msra.mxu1 %v2465_v30 }
 0x379   :  { %2024 = vmatprep.subr.mxu0 %v2317_v0  ;;  %2059 = vmatprep.subr.mxu1 %v2317_v0 }
 0x37a   :  { %2025 = vmatpush3.msra.mxu0 %v2471_v31  ;;  %2026 = vmatprep.mubr.msk.f32.mxu0 %vm2318_vm0, %v2317_v0 }
 0x37b   :  { %2060 = vmatpush3.msra.mxu1 %v2473_v32  ;;  %2061 = vmatprep.mubr.msk.f32.mxu1 %vm2318_vm0, %v2317_v0 }
 0x37c   :  { %2064 = vmatprep.subr.mxu0 %v2317_v0  ;;  %2099 = vmatprep.subr.mxu1 %v2317_v0 }
 0x41b   :  { %v729_v50 = vpop.f32.mrf.mxu0  ;;  %v799_v51 = vpop.f32.mrf.mxu1 }
 0x41c   :  { %v803_v52 = vsub.f32 %v2563_v35, %v729_v50  ;;  %v804_v53 = vsub.f32 %v2565_v36, %v799_v51 }
 0x41d   :  { %v1958_v54 = vpop.f32.mrf.mxu0  ;;  %v1993_v57 = vpop.f32.mrf.mxu1 }
 0x41e   :  { %v805_v58 = vmul.f32 0.3, %v803_v52  ;;  %v806_v59 = vmul.f32 0.3, %v804_v53 }
 0x420   :  { %v2882_v60 = vadd.f32 %v805_v58, %v2804_v48  ;;  %v2885_v61 = vadd.f32 %v806_v59, %v2807_v49 }
 0x422   :  { %2027 = vmatmul.mubr.f32.vlgmr.msra.gmra.mxu0 %v2882_v60  ;;  %2062 = vmatmul.mubr.f32.vlgmr.msra.gmra.mxu1 %v2885_v61 }
 0x423   :  { %2065 = vmatpush3.msra.mxu0 %v2355_v1  ;;  %2100 = vmatpush3.msra.mxu1 %v2357_v2 }
 0x424   :  { %2066 = vmatprep.subr.mxu0 %v2317_v0  ;;  %2101 = vmatprep.subr.mxu1 %v2317_v0 }
 0x425   :  { %2067 = vmatpush3.msra.mxu0 %v2359_v3  ;;  %2102 = vmatpush3.msra.mxu1 %v2363_v4 }
 0x426   :  { %2068 = vmatprep.subr.mxu0 %v2317_v0  ;;  %2103 = vmatprep.subr.mxu1 %v2317_v0 }
 0x427   :  { %2069 = vmatpush3.msra.mxu0 %v2367_v5  ;;  %2104 = vmatpush3.msra.mxu1 %v2369_v6 }
 0x428   :  { %2070 = vmatprep.subr.mxu0 %v2317_v0  ;;  %2105 = vmatprep.subr.mxu1 %v2317_v0 }
 0x429   :  { %2071 = vmatpush3.msra.mxu0 %v2375_v7  ;;  %2106 = vmatpush3.msra.mxu1 %v2377_v8 }
 0x42a   :  { %2072 = vmatprep.subr.mxu0 %v2317_v0  ;;  %2107 = vmatprep.subr.mxu1 %v2317_v0 }
 0x42b   :  { %2073 = vmatpush3.msra.mxu0 %v2383_v9  ;;  %2108 = vmatpush3.msra.mxu1 %v2385_v10 }
 0x42c   :  { %2074 = vmatprep.subr.mxu0 %v2317_v0  ;;  %2109 = vmatprep.subr.mxu1 %v2317_v0 }
 0x42d   :  { %2075 = vmatpush3.msra.mxu0 %v2391_v11  ;;  %2110 = vmatpush3.msra.mxu1 %v2393_v12  ;;  %v2213_v11 = vld [vmem:[#allocation2 + $0x78] sm:$0xff] }
 0x42e   :  { %2076 = vmatprep.subr.mxu0 %v2317_v0  ;;  %2111 = vmatprep.subr.mxu1 %v2317_v0  ;;  %v2214_v12 = vld [vmem:[#allocation2 + $0xf8] sm:$0xff] }
 0x42f   :  { %2077 = vmatpush3.msra.mxu0 %v2399_v13  ;;  %2112 = vmatpush3.msra.mxu1 %v2401_v14  ;;  %v2215_v13 = vld [vmem:[#allocation2 + $0x70] sm:$0xff] }
 0x430   :  { %2078 = vmatprep.subr.mxu0 %v2317_v0  ;;  %2113 = vmatprep.subr.mxu1 %v2317_v0  ;;  %v2216_v14 = vld [vmem:[#allocation2 + $0xf0] sm:$0xff] }
 0x431   :  { %2079 = vmatpush3.msra.mxu0 %v2407_v15  ;;  %2114 = vmatpush3.msra.mxu1 %v2409_v16  ;;  %v2217_v15 = vld [vmem:[#allocation2 + $0x68] sm:$0xff] }
 0x432   :  { %2080 = vmatprep.subr.mxu0 %v2317_v0  ;;  %2115 = vmatprep.subr.mxu1 %v2317_v0  ;;  %v2218_v16 = vld [vmem:[#allocation2 + $0xe8] sm:$0xff] }
 0x433   :  { %2081 = vmatpush3.msra.mxu0 %v2415_v17  ;;  %2116 = vmatpush3.msra.mxu1 %v2417_v18  ;;  %v2219_v17 = vld [vmem:[#allocation2 + $0x60] sm:$0xff] }
 0x434   :  { %2082 = vmatprep.subr.mxu0 %v2317_v0  ;;  %2117 = vmatprep.subr.mxu1 %v2317_v0  ;;  %v2220_v18 = vld [vmem:[#allocation2 + $0xe0] sm:$0xff] }
 0x435   :  { %2083 = vmatpush3.msra.mxu0 %v2423_v19  ;;  %2118 = vmatpush3.msra.mxu1 %v2425_v20  ;;  %v2221_v19 = vld [vmem:[#allocation2 + $0x58] sm:$0xff] }
 0x436   :  { %2084 = vmatprep.subr.mxu0 %v2317_v0  ;;  %2119 = vmatprep.subr.mxu1 %v2317_v0  ;;  %v2222_v20 = vld [vmem:[#allocation2 + $0xd8] sm:$0xff] }
 0x437   :  { %2085 = vmatpush3.msra.mxu0 %v2431_v21  ;;  %2120 = vmatpush3.msra.mxu1 %v2433_v22  ;;  %v2223_v21 = vld [vmem:[#allocation2 + $0x50] sm:$0xff] }
 0x438   :  { %2086 = vmatprep.subr.mxu0 %v2317_v0  ;;  %2121 = vmatprep.subr.mxu1 %v2317_v0  ;;  %v2224_v22 = vld [vmem:[#allocation2 + $0xd0] sm:$0xff] }
 0x439   :  { %2087 = vmatpush3.msra.mxu0 %v2439_v23  ;;  %2122 = vmatpush3.msra.mxu1 %v2441_v24  ;;  %v2225_v23 = vld [vmem:[#allocation2 + $0x48] sm:$0xff] }
 0x43a   :  { %2088 = vmatprep.subr.mxu0 %v2317_v0  ;;  %2123 = vmatprep.subr.mxu1 %v2317_v0  ;;  %v2226_v24 = vld [vmem:[#allocation2 + $0xc8] sm:$0xff] }
 0x43b   :  { %2089 = vmatpush3.msra.mxu0 %v2447_v25  ;;  %2124 = vmatpush3.msra.mxu1 %v2449_v26  ;;  %v2227_v25 = vld [vmem:[#allocation2 + $0x40] sm:$0xff] }
 0x43c   :  { %2090 = vmatprep.subr.mxu0 %v2317_v0  ;;  %2125 = vmatprep.subr.mxu1 %v2317_v0  ;;  %v2228_v26 = vld [vmem:[#allocation2 + $0xc0] sm:$0xff] }
 0x43d   :  { %2091 = vmatpush3.msra.mxu0 %v2455_v27  ;;  %2126 = vmatpush3.msra.mxu1 %v2457_v28  ;;  %v2229_v27 = vld [vmem:[#allocation2 + $0x38] sm:$0xff] }
 0x43e   :  { %2092 = vmatprep.subr.mxu0 %v2317_v0  ;;  %2127 = vmatprep.subr.mxu1 %v2317_v0  ;;  %v2230_v28 = vld [vmem:[#allocation2 + $0xb8] sm:$0xff] }
 0x43f   :  { %2093 = vmatpush3.msra.mxu0 %v2463_v29  ;;  %2128 = vmatpush3.msra.mxu1 %v2465_v30  ;;  %v2231_v29 = vld [vmem:[#allocation2 + $0x30] sm:$0xff] }
 0x440   :  { %2094 = vmatprep.subr.mxu0 %v2317_v0  ;;  %2129 = vmatprep.subr.mxu1 %v2317_v0  ;;  %v2232_v30 = vld [vmem:[#allocation2 + $0xb0] sm:$0xff] }
 0x441   :  { %2095 = vmatpush3.msra.mxu0 %v2471_v31  ;;  %2096 = vmatprep.mubr.msk.f32.mxu0 %vm2318_vm0, %v2317_v0  ;;  %v2233_v31 = vld [vmem:[#allocation2 + $0x28] sm:$0xff] }
 0x442   :  { %2130 = vmatpush3.msra.mxu1 %v2473_v32  ;;  %2131 = vmatprep.mubr.msk.f32.mxu1 %vm2318_vm0, %v2317_v0  ;;  %v2234_v32 = vld [vmem:[#allocation2 + $0xa8] sm:$0xff] }
 0x443   :  { %2134 = vmatprep.subr.mxu0 %v2317_v0  ;;  %2169 = vmatprep.subr.mxu1 %v2317_v0 }
 0x4e2   :  { %v875_v1 = vpop.f32.mrf.mxu0  ;;  %v945_v2 = vpop.f32.mrf.mxu1 }
 0x4e3   :  { %v949_v3 = vsub.f32 %v2563_v35, %v875_v1  ;;  %v950_v4 = vsub.f32 %v2565_v36, %v945_v2  ;;  %v1249_v2 = vlaneseq }
 0x4e4   :  { %v2028_v5 = vpop.f32.mrf.mxu0  ;;  %v2063_v6 = vpop.f32.mrf.mxu1 }
 0x4e5   :  { %v951_v7 = vmul.f32 0.3, %v949_v3  ;;  %v952_v8 = vmul.f32 0.3, %v950_v4  ;;  %v1250_v3 = vshrl.u32 %v1249_v2, 7 }
 0x4e7   :  { %v2960_v9 = vadd.f32 %v951_v7, %v2882_v60  ;;  %v2963_v10 = vadd.f32 %v952_v8, %v2885_v61  ;;  %v1251_v4 = vsub.s32 0, %v1250_v3 }
 0x4e9   :  { %2097 = vmatmul.mubr.f32.vlgmr.msra.gmra.mxu0 %v2960_v9  ;;  %2132 = vmatmul.mubr.f32.vlgmr.msra.gmra.mxu1 %v2963_v10  ;;  %v1256_v5 = vrot.slane %v2651_v56, %v1251_v4  ;;  %v1264_v6 = vrot.slane %v2726_v34, %v1251_v4  ;;  %v1268_v7 = vrot.slane %v2729_v37, %v1251_v4 }
 0x4ea   :  { %2135 = vmatpush3.msra.mxu0 %v2213_v11  ;;  %2170 = vmatpush3.msra.mxu1 %v2214_v12  ;;  %v1292_v37 = vrot.slane %v2885_v61, %v1251_v4 }
 0x4eb   :  { %2136 = vmatprep.subr.mxu0 %v2317_v0  ;;  %2171 = vmatprep.subr.mxu1 %v2317_v0  ;;  %v1333_v11 = vsel %vm1331_vm1, %v2573_v46, %v1256_v5  ;;  %v1300_v46 = vrot.slane %v2960_v9, %v1251_v4 }
 0x4ec   :  { %2137 = vmatpush3.msra.mxu0 %v2215_v13  ;;  %2172 = vmatpush3.msra.mxu1 %v2216_v14  ;;  %v1276_v13 = vrot.slane %v2804_v48, %v1251_v4  ;;  %v1336_v34 = vsel %vm1334_vm2, %v1333_v11, %v1268_v7  ;;  %v1304_v48 = vrot.slane %v2963_v10, %v1251_v4 }
 0x4ed   :  { %2138 = vmatprep.subr.mxu0 %v2317_v0  ;;  %2173 = vmatprep.subr.mxu1 %v2317_v0 }
 0x4ee   :  { %2139 = vmatpush3.msra.mxu0 %v2217_v15  ;;  %2174 = vmatpush3.msra.mxu1 %v2218_v16 }
 0x4ef   :  { %2140 = vmatprep.subr.mxu0 %v2317_v0  ;;  %2175 = vmatprep.subr.mxu1 %v2317_v0 }
 0x4f0   :  { %2141 = vmatpush3.msra.mxu0 %v2219_v17  ;;  %2176 = vmatpush3.msra.mxu1 %v2220_v18  ;;  %v1288_v17 = vrot.slane %v2882_v60, %v1251_v4 }
 0x4f1   :  { %2142 = vmatprep.subr.mxu0 %v2317_v0  ;;  %2177 = vmatprep.subr.mxu1 %v2317_v0 }
 0x4f2   :  { %2143 = vmatpush3.msra.mxu0 %v2221_v19  ;;  %2178 = vmatpush3.msra.mxu1 %v2222_v20 }
 0x4f3   :  { %2144 = vmatprep.subr.mxu0 %v2317_v0  ;;  %2179 = vmatprep.subr.mxu1 %v2317_v0 }
 0x4f4   :  { %2145 = vmatpush3.msra.mxu0 %v2223_v21  ;;  %2180 = vmatpush3.msra.mxu1 %v2224_v22 }
 0x4f5   :  { %2146 = vmatprep.subr.mxu0 %v2317_v0  ;;  %2181 = vmatprep.subr.mxu1 %v2317_v0 }
 0x4f6   :  { %2147 = vmatpush3.msra.mxu0 %v2225_v23  ;;  %2182 = vmatpush3.msra.mxu1 %v2226_v24 }
 0x4f7   :  { %2148 = vmatprep.subr.mxu0 %v2317_v0  ;;  %2183 = vmatprep.subr.mxu1 %v2317_v0 }
 0x4f8   :  { %2149 = vmatpush3.msra.mxu0 %v2227_v25  ;;  %2184 = vmatpush3.msra.mxu1 %v2228_v26 }
 0x4f9   :  { %2150 = vmatprep.subr.mxu0 %v2317_v0  ;;  %2185 = vmatprep.subr.mxu1 %v2317_v0 }
 0x4fa   :  { %2151 = vmatpush3.msra.mxu0 %v2229_v27  ;;  %2186 = vmatpush3.msra.mxu1 %v2230_v28 }
 0x4fb   :  { %2152 = vmatprep.subr.mxu0 %v2317_v0  ;;  %2187 = vmatprep.subr.mxu1 %v2317_v0 }
 0x4fc   :  { %2153 = vmatpush3.msra.mxu0 %v2231_v29  ;;  %2188 = vmatpush3.msra.mxu1 %v2232_v30 }
 0x4fd   :  { %2154 = vmatprep.subr.mxu0 %v2317_v0  ;;  %2189 = vmatprep.subr.mxu1 %v2317_v0 }
 0x4fe   :  { %2155 = vmatpush3.msra.mxu0 %v2233_v31  ;;  %2190 = vmatpush3.msra.mxu1 %v2234_v32 }
 0x4ff   :  { %2156 = vmatprep.subr.mxu0 %v2317_v0  ;;  %2191 = vmatprep.subr.mxu1 %v2317_v0 }
 0x500   :  { %2157 = vmatpush3.msra.mxu0 %v2235_v62  ;;  %2192 = vmatpush3.msra.mxu1 %v2236_v63 }
 0x501   :  { %2158 = vmatprep.subr.mxu0 %v2317_v0  ;;  %2193 = vmatprep.subr.mxu1 %v2317_v0 }
 0x502   :  { %2159 = vmatpush3.msra.mxu0 %v2237_v33  ;;  %2194 = vmatpush3.msra.mxu1 %v2238_v38 }
 0x503   :  { %2160 = vmatprep.subr.mxu0 %v2317_v0  ;;  %2195 = vmatprep.subr.mxu1 %v2317_v0 }
 0x504   :  { %2161 = vmatpush3.msra.mxu0 %v2239_v39  ;;  %2196 = vmatpush3.msra.mxu1 %v2240_v40 }
 0x505   :  { %2162 = vmatprep.subr.mxu0 %v2317_v0  ;;  %2197 = vmatprep.subr.mxu1 %v2317_v0 }
 0x506   :  { %2163 = vmatpush3.msra.mxu0 %v2241_v41  ;;  %2198 = vmatpush3.msra.mxu1 %v2242_v42 }
 0x507   :  { %2164 = vmatprep.subr.mxu0 %v2317_v0  ;;  %2199 = vmatprep.subr.mxu1 %v2317_v0 }
 0x508   :  { %2165 = vmatpush3.msra.mxu0 %v2243_v43  ;;  %2166 = vmatprep.mubr.msk.f32.mxu0 %vm2318_vm0, %v2317_v0 }
 0x509   :  { %2200 = vmatpush3.msra.mxu1 %v2244_v44  ;;  %2201 = vmatprep.mubr.msk.f32.mxu1 %vm2318_vm0, %v2317_v0  ;;  %v1252_v0 = vrot.slane %v2648_v55, %v1251_v4  ;;  %v1280_v55 = vrot.slane %v2807_v49, %v1251_v4 }
 0x50b   :  { %v1332_v8 = vsel %vm1331_vm1, %v2570_v45, %v1252_v0 }
 0x50c   :  { %v1335_v12 = vsel %vm1334_vm2, %v1332_v8, %v1264_v6 }
 0x50d   :  { %v1338_v49 = vsel %vm1337_vm3, %v1335_v12, %v1276_v13 }
 0x50e   :  { %v1341_v61 = vsel %vm1340_vm4, %v1338_v49, %v1288_v17 }
 0x50f   :  { %v1344_v24 = vsel %vm1343_vm5, %v1341_v61, %v1300_v46 }
 0x5a9   :  { %v1021_v47 = vpop.f32.mrf.mxu0  ;;  %v1091_v50 = vpop.f32.mrf.mxu1 }
 0x5aa   :  { %v1095_v51 = vsub.f32 %v2563_v35, %v1021_v47  ;;  %v1096_v52 = vsub.f32 %v2565_v36, %v1091_v50 }
 0x5ab   :  { %v2098_v53 = vpop.f32.mrf.mxu0  ;;  %v2133_v54 = vpop.f32.mrf.mxu1 }
 0x5ac   :  { %v1097_v57 = vmul.f32 0.3, %v1095_v51  ;;  %v1098_v58 = vmul.f32 0.3, %v1096_v52 }
 0x5ae   :  { %v1099_v59 = vadd.f32 %v1097_v57, %v2960_v9  ;;  %v1100_v1 = vadd.f32 %v1098_v58, %v2963_v10 }
 0x5b0   :  { %2167 = vmatmul.mubr.f32.vlgmr.msra.gmra.mxu0 %v1099_v59  ;;  %2202 = vmatmul.mubr.f32.vlgmr.msra.gmra.mxu1 %v1100_v1  ;;  %v1312_v21 = vrot.slane %v1099_v59, %v1251_v4 }
 0x5b2   :  { %v1347_v26 = vsel %vm1346_vm6, %v1344_v24, %v1312_v21 }
 0x670   :  { %v1167_v14 = vpop.f32.mrf.mxu0  ;;  %v1237_v15 = vpop.f32.mrf.mxu1 }
 0x671   :  { %v1241_v16 = vsub.f32 %v2563_v35, %v1167_v14  ;;  %v1242_v56 = vsub.f32 %v2565_v36, %v1237_v15  ;;  %v1316_v35 = vrot.slane %v1100_v1, %v1251_v4  ;;  %v1339_v36 = vsel %vm1337_vm3, %v1336_v34, %v1280_v55 }
 0x672   :  { %v2168_v45 = vpop.f32.mrf.mxu0  ;;  %v2203_v18 = vpop.f32.mrf.mxu1  ;;  %v1342_v9 = vsel %vm1340_vm4, %v1339_v36, %v1292_v37 }
 0x673   :  { %v1243_v19 = vmul.f32 0.3, %v1241_v16  ;;  %v1244_v20 = vmul.f32 0.3, %v1242_v56  ;;  %v1345_v25 = vsel %vm1343_vm5, %v1342_v9, %v1304_v48 }
 0x674   :  { %v1348_v27 = vsel %vm1346_vm6, %v1345_v25, %v1316_v35 }
 0x675   :  { %v1245_v22 = vadd.f32 %v1243_v19, %v1099_v59  ;;  %v1246_v60 = vadd.f32 %v1244_v20, %v1100_v1 }
 0x677   :  { %v1324_v10 = vrot.slane %v1245_v22, %v1251_v4  ;;  %v1328_v23 = vrot.slane %v1246_v60, %v1251_v4 }
 0x679   :  { %v1350_v28 = vsel %vm1349_vm7, %v1347_v26, %v1324_v10  ;;  %v1351_v29 = vsel %vm1349_vm7, %v1348_v27, %v1328_v23 }
 0x67a   :  { %1352 = vst [vmem:[#allocation7] sm:$0xff] %v1350_v28  ;;  %1353 = vst [vmem:[#allocation7 + $0x8] sm:$0xff] %v1351_v29 }
 0x67b   :  { %2296 = shalt.err (!%p2293_p0)
}
 0x67c   :  { %1365 = dma.vmem_to_hbm [thread:$0]  %s1360_s28, 256, %s3032_s3, [#allocation4], %s2312_s15, %s2312_s15, %s2313_s16  }
 0x67d   :  { %2309 = dma.done.wait [#allocation4], 256  }
 0x67e   :  { %2310 = vsyncadd [#allocation4], 4294967040 }
 0x67f   :  { %1369 = vsyncpa [#allocation3], 1 }
 0x680   :  { %1370 = vsyncpa [#allocation6], 1 }
 0x681   :  { %1371 = vsyncpa [#allocation4], 1 }

</bundles_post_ra>
